<compile_context>
chip_gen: v7x
topology: tpu7x:2x2x1
jax: 0.10.0
libtpu: 0.0.40
codegen_flags: <defaults>
</compile_context>

<pallas_src>
import jax
import jax.numpy as jnp
from jax.experimental import pallas as pl
from jax.experimental.pallas import tpu as pltpu


def decide_hs(d):
    if d < 4:
        return 4
    if d < 16:
        return d
    if d < 64:
        return int(1.5 * d)
    return min(int(1.5 * d), 256)


# ---------------------------------------------------------------------------
# Kernels
# ---------------------------------------------------------------------------
def mlp_fwd_kernel(x_ref, w1_ref, b1_ref, w2_ref, b2_ref, y_ref):
    """One batch tile of sigmoid(relu(x @ W1 + b1) @ W2 + b2).

    x_ref  : (TB, d)   streamed batch tile (pipelined over the grid)
    w1_ref : (d, H)    VMEM-resident (constant index_map -> fetched once)
    b1_ref : (1, H)    VMEM-resident
    w2_ref : (1, H)    second-layer weights stored as a row, VMEM-resident
    b2_ref : (1, 1)    VMEM-resident
    y_ref  : (TB, 128) lane-dense output slab; column 0 holds the prediction
    """
    x = x_ref[...]                       # (TB, d) float32
    w1 = w1_ref[...]                     # (d, H)
    b1 = b1_ref[...]                     # (1, H)
    w2_row = w2_ref[...]                 # (1, H)
    b2 = b2_ref[...]                     # (1, 1)

    # Layer 1 on the MXU with f32 accumulation, then ReLU on the VPU.
    h = jnp.dot(x, w1, preferred_element_type=jnp.float32) + b1   # (TB, H)
    h = jnp.maximum(h, 0.0)

    # Layer 2 (out_features == 1): VPU multiply + lane reduction rather than a
    # degenerate N=1 MXU matmul.
    logits = jnp.sum(h * w2_row, axis=-1, keepdims=True) + b2     # (TB, 1)

    # Sigmoid: exp and approximate reciprocal both run on the EUP slot.
    # Approx reciprocal relative error is ~1e-3 or better, fine at sigmoid
    # output precision.
    y = pl.reciprocal(1.0 + jnp.exp(-logits), approx=True)        # (TB, 1)

    # Lane-dense store: broadcast across 128 lanes -> unmasked full-width vst.
    # The wrapper slices column 0 back out.
    y_ref[...] = jnp.broadcast_to(y, y_ref.shape)


def l2_kernel(w1_ref, b1_ref, w2_ref, b2_ref, l2_ref):
    """Sum of squared L2 norms of all parameters.

    Runs as a single one-shot pallas_call (no grid), so the reduction and its
    (1, 1) writeback happen exactly once per forward pass instead of once per
    batch tile.
    """
    l2 = (jnp.sum(w1_ref[...] * w1_ref[...])
          + jnp.sum(b1_ref[...] * b1_ref[...])
          + jnp.sum(w2_ref[...] * w2_ref[...])
          + jnp.sum(b2_ref[...] * b2_ref[...]))
    l2_ref[...] = jnp.full((1, 1), l2, dtype=jnp.float32)


# ---------------------------------------------------------------------------
# Wrapper
# ---------------------------------------------------------------------------
def _choose_tb(batch):
    """Batch tile size.

    Target >=512 rows per grid step to amortize the ~0.35 us/step pipeline
    overhead; for small batches just round the batch up to a sublane multiple.
    512 rows of f32 at (d + 128) lanes, double-buffered, stays well under the
    16 MiB v5e scoped-VMEM default and v7x's 64 MiB physical VMEM.
    """
    if batch >= 512:
        return 512
    return max(8, ((batch + 7) // 8) * 8)


def neural_network_cln_l2(x, w1, b1, w2, b2, *, tb=None):
    """Forward pass of NeuralNetworkCLNL2.

    x  : (B, d)  any real dtype (cast to float32, mirroring `.to(torch.float32)`)
    w1 : (d, H)  first Linear weight, stored pre-transposed (in, out)
    b1 : (H,)
    w2 : (H, 1)  output Linear weight, stored pre-transposed (in, out)
    b2 : (1,)
    Returns (y_pred of shape (B, 1) float32, scalar l2_penalty float32).
    """
    x = x.astype(jnp.float32)
    B, d = x.shape
    H = w1.shape[1]

    if tb is None:
        tb = _choose_tb(B)
    assert tb % 8 == 0, "batch tile must be a sublane multiple"
    num_tiles = pl.cdiv(B, tb)
    b_pad = num_tiles * tb
    if b_pad != B:
        # Zero-pad the ragged batch; padded rows are computed then discarded.
        x = jnp.pad(x, ((0, b_pad - B), (0, 0)))

    w1 = w1.astype(jnp.float32)
    b1_row = b1.reshape(1, H).astype(jnp.float32)
    w2_row = w2.reshape(1, H).astype(jnp.float32)   # (H,1) -> (1,H), same values
    b2_sc = b2.reshape(1, 1).astype(jnp.float32)

    cost = pl.CostEstimate(
        flops=2 * b_pad * d * H + 4 * b_pad * H + 8 * b_pad,
        transcendentals=2 * b_pad,  # exp + approximate reciprocal per row
        bytes_accessed=4 * (b_pad * d + d * H + 2 * H + 1 + b_pad * 128),
    )

    y_wide = pl.pallas_call(
        mlp_fwd_kernel,
        out_shape=jax.ShapeDtypeStruct((b_pad, 128), jnp.float32),
        grid_spec=pltpu.PrefetchScalarGridSpec(
            num_scalar_prefetch=0,
            grid=(num_tiles,),
            in_specs=[
                pl.BlockSpec((tb, d), lambda i: (i, 0)),   # x: streamed tiles
                pl.BlockSpec((d, H), lambda i: (0, 0)),    # w1: VMEM-resident
                pl.BlockSpec((1, H), lambda i: (0, 0)),    # b1: VMEM-resident
                pl.BlockSpec((1, H), lambda i: (0, 0)),    # w2 row: resident
                pl.BlockSpec((1, 1), lambda i: (0, 0)),    # b2: resident
            ],
            out_specs=pl.BlockSpec((tb, 128), lambda i: (i, 0)),
        ),
        compiler_params=pltpu.CompilerParams(
            dimension_semantics=("parallel",),       # megacore split on v7x
            vmem_limit_bytes=32 * 1024 * 1024,       # explicit, safe v5e..v7x
        ),
        cost_estimate=cost,
    )(x, w1, b1_row, w2_row, b2_sc)

    y_pred = y_wide[:B, 0:1]                         # drop padding + lane slab

    # Parameter-only L2 penalty: one-shot kernel, computed once per forward.
    l2 = pl.pallas_call(
        l2_kernel,
        out_shape=jax.ShapeDtypeStruct((1, 1), jnp.float32),
        in_specs=[
            pl.BlockSpec(memory_space=pltpu.MemorySpace.VMEM),
            pl.BlockSpec(memory_space=pltpu.MemorySpace.VMEM),
            pl.BlockSpec(memory_space=pltpu.MemorySpace.VMEM),
            pl.BlockSpec(memory_space=pltpu.MemorySpace.VMEM),
        ],
        out_specs=pl.BlockSpec(memory_space=pltpu.MemorySpace.VMEM),
    )(w1, b1_row, w2_row, b2_sc)

    return y_pred, l2[0, 0]


def init_params(key, d):
    """Deterministic init mimicking nn.Linear (uniform +/- 1/sqrt(fan_in))."""
    H = decide_hs(d)
    k1, k2, k3, k4 = jax.random.split(key, 4)
    bound1 = 1.0 / jnp.sqrt(jnp.float32(d))
    bound2 = 1.0 / jnp.sqrt(jnp.float32(H))
    # Stored pre-transposed: (in_features, out_features).
    w1 = jax.random.uniform(k1, (d, H), jnp.float32, -bound1, bound1)
    b1 = jax.random.uniform(k2, (H,), jnp.float32, -bound1, bound1)
    w2 = jax.random.uniform(k3, (H, 1), jnp.float32, -bound2, bound2)
    b2 = jax.random.uniform(k4, (1,), jnp.float32, -bound2, bound2)
    return w1, b1, w2, b2


if __name__ == "__main__":
    key = jax.random.PRNGKey(0)
    kx1, kx2, kp1, kp2 = jax.random.split(key, 4)

    def reference(x, w1, b1, w2, b2):
        xf = x.astype(jnp.float32)
        h = jnp.maximum(xf @ w1 + b1, 0.0)
        y = jax.nn.sigmoid(h @ w2 + b2)
        l2 = (jnp.sum(w1 ** 2) + jnp.sum(b1 ** 2)
              + jnp.sum(w2 ** 2) + jnp.sum(b2 ** 2))
        return y, l2

    # Tolerance for y: the kernel uses the approximate EUP reciprocal inside
    # the sigmoid, so allow a small relative/absolute slack.  L2 is exact math.
    Y_TOL = 5e-3

    # Case 1: tiny shapes, single grid step, ragged batch (B not multiple of 8).
    B1, d1 = 13, 8                      # decide_hs(8) == 8
    x1 = jax.random.normal(kx1, (B1, d1), jnp.float32)
    p1 = init_params(kp1, d1)
    y1, l21 = neural_network_cln_l2(x1, *p1)
    jax.block_until_ready((y1, l21))
    y1_ref, l21_ref = reference(x1, *p1)
    assert y1.shape == (B1, 1)
    assert jnp.allclose(y1, y1_ref, atol=Y_TOL, rtol=Y_TOL)
    assert jnp.allclose(l21, l21_ref, atol=1e-5, rtol=1e-5)

    # Case 2: several batch tiles -> exercises the pipelined grid + padding.
    B2, d2 = 300, 32                    # decide_hs(32) == 48; tb=128 -> 3 tiles
    x2 = jax.random.normal(kx2, (B2, d2), jnp.float32)
    p2 = init_params(kp2, d2)
    y2, l22 = neural_network_cln_l2(x2, *p2, tb=128)
    jax.block_until_ready((y2, l22))
    y2_ref, l22_ref = reference(x2, *p2)
    assert y2.shape == (B2, 1)
    assert jnp.allclose(y2, y2_ref, atol=Y_TOL, rtol=Y_TOL)
    assert jnp.allclose(l22, l22_ref, atol=1e-5, rtol=1e-5)

    print("KERNEL_OK")
</pallas_src>

<mosaic_0001>
module attributes {stable_mosaic.version = 11 : i64} {
  func.func @mlp_fwd_kernel(%arg0: i32, %arg1: memref<16x8xf32, #tpu.memory_space<vmem>>, %arg2: memref<8x8xf32, #tpu.memory_space<vmem>>, %arg3: memref<1x8xf32, #tpu.memory_space<vmem>>, %arg4: memref<1x8xf32, #tpu.memory_space<vmem>>, %arg5: memref<1x1xf32, #tpu.memory_space<vmem>>, %arg6: memref<16x128xf32, #tpu.memory_space<vmem>>) attributes {dimension_semantics = [#tpu.dimension_semantics<parallel>], iteration_bounds = array<i64: 1>, scalar_prefetch = 0 : i64, scratch_operands = 0 : i64, tpu.core_type = #tpu.core_type<tc>, window_params = [{transform_indices = @transform_0, window_bounds = array<i64: 16, 8>}, {pipeline_mode = #tpu.pipeline_mode<synchronous>, transform_indices = @transform_1, window_bounds = array<i64: 8, 8>}, {pipeline_mode = #tpu.pipeline_mode<synchronous>, transform_indices = @transform_2, window_bounds = array<i64: 1, 8>}, {pipeline_mode = #tpu.pipeline_mode<synchronous>, transform_indices = @transform_3, window_bounds = array<i64: 1, 8>}, {pipeline_mode = #tpu.pipeline_mode<synchronous>, transform_indices = @transform_4, window_bounds = array<i64: 1, 1>}, {transform_indices = @transform_5, window_bounds = array<i64: 16, 128>}]} {
    %c0 = arith.constant 0 : index
    %c0_0 = arith.constant 0 : index
    %0 = vector.load %arg1[%c0, %c0_0] : memref<16x8xf32, #tpu.memory_space<vmem>>, vector<16x8xf32>
    %c0_1 = arith.constant 0 : index
    %c0_2 = arith.constant 0 : index
    %1 = vector.load %arg2[%c0_1, %c0_2] : memref<8x8xf32, #tpu.memory_space<vmem>>, vector<8x8xf32>
    %c0_3 = arith.constant 0 : index
    %c0_4 = arith.constant 0 : index
    %2 = vector.load %arg3[%c0_3, %c0_4] : memref<1x8xf32, #tpu.memory_space<vmem>>, vector<1x8xf32>
    %c0_5 = arith.constant 0 : index
    %c0_6 = arith.constant 0 : index
    %3 = vector.load %arg4[%c0_5, %c0_6] : memref<1x8xf32, #tpu.memory_space<vmem>>, vector<1x8xf32>
    %c0_7 = arith.constant 0 : index
    %c0_8 = arith.constant 0 : index
    %4 = vector.load %arg5[%c0_7, %c0_8] : memref<1x1xf32, #tpu.memory_space<vmem>>, vector<1x1xf32>
    %cst = arith.constant dense<0.000000e+00> : vector<16x8xf32>
    %5 = tpu.matmul %0, %1, %cst {dimension_numbers = #tpu.dot_dimension_numbers<[1], [0], [0], [1], [0, 0, 1, 1], [], []>} : vector<16x8xf32>, vector<8x8xf32>, vector<16x8xf32> -> vector<16x8xf32>
    %6 = vector.broadcast %2 : vector<1x8xf32> to vector<16x8xf32>
    %7 = arith.addf %5, %6 : vector<16x8xf32>
    %cst_9 = arith.constant 0.000000e+00 : f32
    %8 = vector.broadcast %cst_9 : f32 to vector<16x8xf32>
    %9 = arith.maximumf %7, %8 : vector<16x8xf32>
    %10 = vector.broadcast %3 : vector<1x8xf32> to vector<16x8xf32>
    %11 = arith.mulf %9, %10 : vector<16x8xf32>
    %cst_10 = arith.constant dense<0.000000e+00> : vector<16xf32>
    %12 = vector.multi_reduction <add>, %11, %cst_10 [1] : vector<16x8xf32> to vector<16xf32>
    %13 = vector.shape_cast %12 : vector<16xf32> to vector<16x1xf32>
    %14 = vector.broadcast %4 : vector<1x1xf32> to vector<16x1xf32>
    %15 = arith.addf %13, %14 : vector<16x1xf32>
    %cst_11 = arith.constant 0.000000e+00 : f32
    %16 = vector.broadcast %cst_11 : f32 to vector<16x1xf32>
    %17 = arith.subf %16, %15 : vector<16x1xf32>
    %18 = math.exp %17 : vector<16x1xf32>
    %cst_12 = arith.constant 1.000000e+00 : f32
    %19 = vector.broadcast %cst_12 : f32 to vector<16x1xf32>
    %20 = arith.addf %19, %18 : vector<16x1xf32>
    %21 = tpu.reciprocal %20 {approx = true} : vector<16x1xf32> -> vector<16x1xf32>
    %22 = vector.shape_cast %21 : vector<16x1xf32> to vector<16x1xf32>
    %23 = vector.broadcast %22 : vector<16x1xf32> to vector<16x128xf32>
    %c0_13 = arith.constant 0 : index
    %c0_14 = arith.constant 0 : index
    %24 = vector.load %arg6[%c0_13, %c0_14] : memref<16x128xf32, #tpu.memory_space<vmem>>, vector<16x128xf32>
    tpu.vector_store %arg6[%c0_13, %c0_14], %23 {strides = array<i32>} : memref<16x128xf32, #tpu.memory_space<vmem>>, vector<16x128xf32>,
    return
  }
  func.func @transform_0(%arg0: i32) -> (i32, i32) {
    %c0_i32 = arith.constant 0 : i32
    %c0_i32_0 = arith.constant 0 : i32
    return %arg0, %c0_i32 : i32, i32
  }
  func.func @transform_1(%arg0: i32) -> (i32, i32) {
    %c0_i32 = arith.constant 0 : i32
    %c0_i32_0 = arith.constant 0 : i32
    %c0_i32_1 = arith.constant 0 : i32
    return %c0_i32, %c0_i32_0 : i32, i32
  }
  func.func @transform_2(%arg0: i32) -> (i32, i32) {
    %c0_i32 = arith.constant 0 : i32
    %c0_i32_0 = arith.constant 0 : i32
    %c0_i32_1 = arith.constant 0 : i32
    return %c0_i32, %c0_i32_0 : i32, i32
  }
  func.func @transform_3(%arg0: i32) -> (i32, i32) {
    %c0_i32 = arith.constant 0 : i32
    %c0_i32_0 = arith.constant 0 : i32
    %c0_i32_1 = arith.constant 0 : i32
    return %c0_i32, %c0_i32_0 : i32, i32
  }
  func.func @transform_4(%arg0: i32) -> (i32, i32) {
    %c0_i32 = arith.constant 0 : i32
    %c0_i32_0 = arith.constant 0 : i32
    %c0_i32_1 = arith.constant 0 : i32
    return %c0_i32, %c0_i32_0 : i32, i32
  }
  func.func @transform_5(%arg0: i32) -> (i32, i32) {
    %c0_i32 = arith.constant 0 : i32
    %c0_i32_0 = arith.constant 0 : i32
    return %arg0, %c0_i32 : i32, i32
  }
}

</mosaic_0001>

<bundles_post_ra>
// kernel: tpu_custom_call.1
= control target key start
LH: loop header
LB: loop body
LE: loop exit
PB: predicated region body
PF: predicated region fallthrough
CT: control target
= control target key end

     0   :  { %s298_s0 = inlined_call_operand.vmem [shape: f32[16,8], index: 0, kind: input, shape index: {}]   ;;  %s299_s1 = inlined_call_operand.vmem [shape: f32[8,8], index: 1, kind: input, shape index: {}]   ;;  %s300_s2 = inlined_call_operand.vmem [shape: f32[1,8], index: 2, kind: input, shape index: {}]   ;;  %s301_s3 = inlined_call_operand.vmem [shape: f32[1,8], index: 3, kind: input, shape index: {}]   ;;  %s302_s4 = inlined_call_operand.<no memory space> [shape: f32[1,1], index: 4, kind: input, shape index: {}]   ;;  %s303_s5 = inlined_call_operand.hbm [shape: f32[16,128], index: 5, kind: output, shape index: {}]  }
   0x1   :  { %v10_v0 = vstv %s302_s4 }
   0x2   :  { %11 = vst [vmem:[#allocation2] sm:$0x1] %v10_v0 }
   0x3   :  { %v25_v1 = vld [vmem:[%s299_s1] sm:$0xff]  ;;  %vm35_vm0 = vcmask 64512   ;;  %v24_v3 = vld [vmem:[%s298_s0 + $0x8] sm:$0xff] }
   0x4   :  { %v23_v2 = vld [vmem:[%s298_s0] sm:$0xff]  ;;  %187 = vmatprep.subr.mxu0 %v25_v1 }
   0x5   :  { %189 = vmatprep.mubr.msk.f32.mxu0 %vm35_vm0, %v23_v2 }
   0x6   :  { %12 = vsyncpa [#allocation4], 0  ;;  %188 = vmatpush3.msra.mxu0 %v25_v1  ;;  %v179_v4 = vld [vmem:[%s300_s2] ss:$0 sm:$0xff]  ;;  %v230_v16 = vmov 0   ;;  %s231_s0 = smov [#allocation3]  }
   0x7   :  { %190 = vmatmul.mubr.msk.f32.vlgmr.msra.gmra.mrb[0].mxu0 %vm35_vm0, %v24_v3  ;;  %v182_v9 = vld [vmem:[%s301_s3] ss:$0 sm:$0xff]  ;;  %196 = vset.pattern.permute.xlu1 %v230_v16  ;;  %s168_s2 = sshll.u32 %s231_s0, 4  ;;  %s169_s2 = int_to_ptr.vmem [resolvable:$true] %s168_s2 }
   0x8   :  { %197 = vset.pattern.permute.xlu0 %v230_v16  ;;  %s206_s3 = scalar_lea.vmem %s169_s2, 256  ;;  %p211_p1 = scmp.lt.s32.totalorder %s169_s2, %s169_s2 }
   0x9   :  { %v183_v17 = vld [vmem:[#allocation2] ss:$0 sm:$0xff]  ;;  %p207_p0 = scmp.ne.s32.totalorder %s169_s2, %s206_s3  ;;  %p212_p2 = scmp.lt.s32.totalorder %s206_s3, %s206_s3 }
   0xb   :  { %p213_p3 = por %p212_p2, %p211_p1 }
   0xd   :  { %p214_p4 = pnand %p213_p3, %p207_p0 }
  0xda   :  { %v191_v5 = vpop.f32.mrb[0].mxu0 }
  0xdb   :  { %v114_v6 = vadd.f32 %v191_v5, %v179_v4  ;;  %v108_v7 = vpop.f32.mrb[1].mxu0 }
  0xdc   :  { %v109_v8 = vadd.f32 %v179_v4, %v108_v7 }
  0xdd   :  { %v118_v10 = vmax.f32 %v114_v6, 0.0 }
  0xde   :  { %v117_v11 = vmax.f32 %v109_v8, 0.0 }
  0xdf   :  { %v126_v14 = vmul.f32 %v182_v9, %v118_v10 }
  0xe0   :  { %v125_v12 = vmul.f32 %v182_v9, %v117_v11 }
  0xe1   :  { %v130_v15 = vsel %vm35_vm0, %v126_v14, 0.0 }
  0xe2   :  { %v127_v13 = vsel %vm35_vm0, %v125_v12, 0.0 }
  0xe3   :  { %128 = vadd.xlane.f32.xlu0 %v127_v13 }
  0xe7   :  { %131 = vadd.xlane.f32.xlu0 %v130_v15 }
 0x170   :  { %v129_v18 = vpop.xlane.xlu0 %128 }
 0x171   :  { %v139_v19 = vadd.f32 %v183_v17, %v129_v18 }
 0x173   :  { %v141_v20 = vsub.f32 0.0, %v139_v19 }
 0x174   :  { %v132_v21 = vpop.xlane.xlu0 %131 }
 0x175   :  { %v143_v22 = vmul.f32 1.442695, %v141_v20  ;;  %v140_v23 = vadd.f32 %v183_v17, %v132_v21 }
 0x177   :  { %198 = vpow2.f32 %v143_v22  ;;  %v142_v24 = vsub.f32 0.0, %v140_v23 }
 0x179   :  { %v145_v25 = vmul.f32 1.442695, %v142_v24 }
 0x17b   :  { %200 = vpow2.f32 %v145_v25 }
 0x181   :  { %v199_v26 = vpop.eup %198 }
 0x182   :  { %v147_v27 = vadd.f32 1.0, %v199_v26 }
 0x184   :  { %202 = vrcp.f32 %v147_v27 }
 0x185   :  { %v201_v28 = vpop.eup %200 }
 0x186   :  { %v148_v29 = vadd.f32 1.0, %v201_v28 }
 0x188   :  { %204 = vrcp.f32 %v148_v29 }
 0x18e   :  { %v203_v30 = vpop.eup %202 }
 0x18f   :  { %153 = vperm.xlu1 %196, %v203_v30  }
 0x192   :  { %v205_v31 = vpop.eup %204 }
 0x193   :  { %158 = vperm.xlu1 %196, %v205_v31  }
 0x20e   :  { %v154_v32 = vpop.permute.xlu1 %153 }
 0x20f   :  { %161 = vst [vmem:[#allocation3] sm:$0xff] %v154_v32 }
 0x212   :  { %v159_v33 = vpop.permute.xlu1 %158 }
 0x213   :  { %162 = vst [vmem:[#allocation3 + $0x8] sm:$0xff] %v159_v33 }
 0x214   :  { %217 = shalt.err (!%p214_p4)
}
 0x215   :  { %s218_s30 = scalar_lea.hbm %s303_s5, 256 }
 0x216   :  { %p219_p5 = scmp.ne.s32.totalorder %s303_s5, %s218_s30  ;;  %p222_p6 = scmp.lt.u32.totalorder %s218_s30, %s303_s5 }
 0x218   :  { %p224_p7 = pnand %p222_p6, %p219_p5 }
 0x21a   :  { %227 = shalt.err (!%p224_p7)
}
 0x21b   :  { %s232_s10 = smov 128   ;;  %s233_s11 = smov 8  }
 0x21c   :  { %174 = dma.vmem_to_hbm [thread:$0]  %s169_s2, 256, %s303_s5, [#allocation4], %s232_s10, %s232_s10, %s233_s11  }
 0x21d   :  { %228 = dma.done.wait [#allocation4], 256  }
 0x21e   :  { %229 = vsyncadd [#allocation4], 4294967040 }
 0x21f   :  { %178 = vsyncpa [#allocation4], 1 }

</bundles_post_ra>
